<compile_context>
chip_gen: v5e
topology: v5e:2x2
jax: 0.10.0
libtpu: 0.0.40
codegen_flags: <defaults>
</compile_context>

<pallas_src>
import functools
import math

import jax
import jax.numpy as jnp
from jax.experimental import pallas as pl
from jax.experimental.pallas import tpu as pltpu

# Keep under v7x's 64 MiB physical VMEM while raising the default scoped limit.
_VMEM_LIMIT = 48 * 1024 * 1024


def _tile(dim, target, align):
    """Largest multiple-of-`align` divisor of `dim` that is <= target.

    Falls back to the full dim only for small dims (dim <= target) or dims with
    no aligned divisor at all (never silently for "not divisible by target").
    """
    if dim <= target:
        return dim
    cand = (target // align) * align
    while cand >= align:
        if dim % cand == 0:
            return cand
        cand -= align
    # TODO(synk): pad + mask via pl.cdiv grids for dims with no aligned divisor.
    return dim


# ----------------------------- tiled GEMM (MXU) ----------------------------- #
def _matmul_kernel(x_ref, w_ref, o_ref, acc_ref):
    """One (tm, tn) output tile; K is the innermost ('arbitrary') grid axis."""
    @pl.when(pl.program_id(2) == 0)
    def _init():
        acc_ref[...] = jnp.zeros_like(acc_ref)

    acc_ref[...] += jnp.dot(x_ref[...], w_ref[...],
                            preferred_element_type=jnp.float32)

    @pl.when(pl.program_id(2) == pl.num_programs(2) - 1)
    def _store():
        o_ref[...] = acc_ref[...].astype(o_ref.dtype)


def pallas_linear(x2d, w_bf, *, tm=256, tn=512, tk=512, out_dtype=jnp.bfloat16):
    """x2d: (M, K), w_bf: (K, N) pre-cast bf16 -> (M, N) = x2d @ w_bf.

    bf16 MXU operands + f32 accumulation; tiled and software-pipelined via
    BlockSpecs with an f32 VMEM accumulator resident across the K grid axis.
    """
    M, K = x2d.shape
    K2, N = w_bf.shape
    assert K == K2
    tm = _tile(M, tm, 8)
    tn = _tile(N, tn, 128)
    tk = _tile(K, tk, 128)
    grid = (M // tm, N // tn, K // tk)

    x_bf = x2d.astype(jnp.bfloat16)

    return pl.pallas_call(
        _matmul_kernel,
        out_shape=jax.ShapeDtypeStruct((M, N), out_dtype),
        grid_spec=pltpu.PrefetchScalarGridSpec(
            num_scalar_prefetch=0,
            grid=grid,
            in_specs=[
                pl.BlockSpec((tm, tk), lambda i, j, k: (i, k)),
                pl.BlockSpec((tk, tn), lambda i, j, k: (k, j)),
            ],
            out_specs=pl.BlockSpec((tm, tn), lambda i, j, k: (i, j)),
            scratch_shapes=[pltpu.VMEM((tm, tn), jnp.float32)],
        ),
        compiler_params=pltpu.CompilerParams(
            dimension_semantics=("parallel", "parallel", "arbitrary"),
            vmem_limit_bytes=_VMEM_LIMIT),
    )(x_bf, w_bf)


# ----------------------- flash-tiled GQA attention kernel ------------------- #
def _flash_attn_kernel(kvlen_ref, q_ref, k_ref, v_ref, o_ref,
                       m_sc, l_sc, acc_sc, *, kv_chunk):
    """Grid = (B, Hkv, num_kv_chunks); one kv-head chunk per step.

    q_ref: (n_rep*S, Dh) bf16, pre-scaled by 1/sqrt(Dh) (all q heads of the
           kv group batched into one MXU operand).
    k_ref, v_ref: (kv_chunk, Dh) bf16 (lane-dense slab of one kv head).
    o_ref: (n_rep*S, Dh) bf16.
    m_sc, l_sc, acc_sc: f32 online-softmax state, resident across kv chunks.
    """
    t = pl.program_id(2)

    @pl.when(t == 0)
    def _init():
        m_sc[...] = jnp.full_like(m_sc, -jnp.inf)
        l_sc[...] = jnp.zeros_like(l_sc)
        acc_sc[...] = jnp.zeros_like(acc_sc)

    kv_len = kvlen_ref[0]
    chunk_start = t * kv_chunk

    @pl.when(chunk_start < kv_len)       # skip fully-padded cache chunks
    def _compute():
        q = q_ref[...]                    # (Sq, Dh)  bf16
        k = k_ref[...]                    # (Tc, Dh)  bf16
        v = v_ref[...]                    # (Tc, Dh)  bf16
        # Q @ K^T without an explicit transpose: contract the last dims.
        s = jax.lax.dot_general(q, k, (((1,), (1,)), ((), ())),
                                preferred_element_type=jnp.float32)  # (Sq, Tc)
        # Mask padded cache positions (>= kv_len); valid positions untouched,
        # so semantics match the unmasked reference over [0, kv_len).
        pos = chunk_start + jax.lax.broadcasted_iota(jnp.int32, s.shape, 1)
        s = jnp.where(pos < kv_len, s, -jnp.inf)

        m_prev = m_sc[...]
        m_new = jnp.maximum(m_prev, jnp.max(s, axis=-1, keepdims=True))
        alpha = jnp.exp(m_prev - m_new)
        p = jnp.exp(s - m_new)
        l_sc[...] = alpha * l_sc[...] + jnp.sum(p, axis=-1, keepdims=True)
        acc_sc[...] = alpha * acc_sc[...] + jnp.dot(
            p.astype(v.dtype), v, preferred_element_type=jnp.float32)
        m_sc[...] = m_new

    @pl.when(t == pl.num_programs(2) - 1)
    def _finalize():
        o_ref[...] = (acc_sc[...] *
                      pl.reciprocal(l_sc[...], approx=True)).astype(o_ref.dtype)


def pallas_flash_attention(q, k_cache, v_cache, kv_len, *, kv_chunk_target=1024):
    """q: (B, Hkv, n_rep*S, Dh) bf16 pre-scaled; caches: (maxB, Hkv, maxT, Dh) bf16.

    kv_len is a runtime scalar (scalar-prefetched into SMEM); the kv-chunk grid
    axis spans the whole cache and empty chunks are skipped in-kernel, so decode
    steps never recompile.  Returns (B, Hkv, n_rep*S, Dh) bf16.
    """
    B, Hkv, Sq, Dh = q.shape
    maxT = k_cache.shape[2]
    kv_chunk = _tile(maxT, kv_chunk_target, 8)
    n_chunks = maxT // kv_chunk
    kv_len_arr = jnp.reshape(kv_len, (1,)).astype(jnp.int32)

    kern = functools.partial(_flash_attn_kernel, kv_chunk=kv_chunk)
    return pl.pallas_call(
        kern,
        out_shape=jax.ShapeDtypeStruct((B, Hkv, Sq, Dh), jnp.bfloat16),
        grid_spec=pltpu.PrefetchScalarGridSpec(
            num_scalar_prefetch=1,
            grid=(B, Hkv, n_chunks),
            in_specs=[
                pl.BlockSpec((None, None, Sq, Dh),
                             lambda b, h, t, kvlen: (b, h, 0, 0)),
                pl.BlockSpec((None, None, kv_chunk, Dh),
                             lambda b, h, t, kvlen: (b, h, t, 0)),
                pl.BlockSpec((None, None, kv_chunk, Dh),
                             lambda b, h, t, kvlen: (b, h, t, 0)),
            ],
            out_specs=pl.BlockSpec((None, None, Sq, Dh),
                                   lambda b, h, t, kvlen: (b, h, 0, 0)),
            scratch_shapes=[pltpu.VMEM((Sq, 1), jnp.float32),   # running max
                            pltpu.VMEM((Sq, 1), jnp.float32),   # running denom
                            pltpu.VMEM((Sq, Dh), jnp.float32)], # f32 accumulator
        ),
        compiler_params=pltpu.CompilerParams(
            dimension_semantics=("parallel", "parallel", "arbitrary"),
            vmem_limit_bytes=_VMEM_LIMIT),
    )(kv_len_arr, q, k_cache, v_cache)


# --------------------------------- JAX glue --------------------------------- #
# TODO(synk): the interleaved complex pairing of RoPE (reshape last dim into
# (Dh//2, 2)) and the KV-cache dynamic_update_slice are kept in plain JAX; the
# matmul/softmax hot paths are in Pallas.
def apply_rotary_embeddings(x, cos, sin):
    """x: (B, S, H, Dh); cos/sin: (S, Dh//2). Matches torch view_as_complex path."""
    B, S, H, Dh = x.shape
    xp = x.astype(jnp.float32).reshape(B, S, H, Dh // 2, 2)
    xr, xi = xp[..., 0], xp[..., 1]
    c = cos[None, :, None, :]
    s = sin[None, :, None, :]
    out = jnp.stack([xr * c - xi * s, xr * s + xi * c], axis=-1)
    return out.reshape(B, S, H, Dh).astype(x.dtype)


def prepare_params(raw):
    """Pre-transpose, pre-concatenate and pre-cast weights once at load time."""
    w_qkv = jnp.concatenate([raw["wq"].T, raw["wk"].T, raw["wv"].T],
                            axis=1).astype(jnp.bfloat16)     # (dim, n_q + 2*n_kv)
    wo_t = raw["wo"].T.astype(jnp.bfloat16)                  # (n_q, dim)
    return {"w_qkv": w_qkv, "wo_t": wo_t}


@functools.partial(jax.jit, static_argnums=(7, 8), donate_argnums=(5, 6))
def self_attention_forward(x, start_pos, cos, sin, params, cache_k, cache_v,
                           n_heads, n_kv_heads):
    """x: (B, S, dim) f32; start_pos: traced int32 scalar (no recompile per step);
    cache_k/cache_v: (max_b, Hkv, max_s, Dh) bf16, donated -> updated in place."""
    B, S, dim = x.shape
    head_dim = dim // n_heads
    n_rep = n_heads // n_kv_heads
    n_q = n_heads * head_dim
    n_kv = n_kv_heads * head_dim
    start_pos = start_pos.astype(jnp.int32)

    # Fused QKV projection: one GEMM reads x once; output stays bf16.
    qkv = pallas_linear(x.reshape(B * S, dim), params["w_qkv"],
                        out_dtype=jnp.bfloat16)
    xq = qkv[:, :n_q].reshape(B, S, n_heads, head_dim)
    xk = qkv[:, n_q:n_q + n_kv].reshape(B, S, n_kv_heads, head_dim)
    xv = qkv[:, n_q + n_kv:].reshape(B, S, n_kv_heads, head_dim)

    xq = apply_rotary_embeddings(xq, cos, sin)
    xk = apply_rotary_embeddings(xk, cos, sin)

    # KV-cache update (persistent bf16, (max_b, Hkv, max_s, Dh) layout; only the
    # new S tokens are transposed, never the whole cache).
    xk_t = jnp.transpose(xk, (0, 2, 1, 3)).astype(cache_k.dtype)
    xv_t = jnp.transpose(xv, (0, 2, 1, 3)).astype(cache_v.dtype)
    cache_k = jax.lax.dynamic_update_slice(cache_k, xk_t, (0, 0, start_pos, 0))
    cache_v = jax.lax.dynamic_update_slice(cache_v, xv_t, (0, 0, start_pos, 0))

    # Q: fold 1/sqrt(Dh) into the bf16 cast once; batch the n_rep heads of each
    # kv group into contiguous rows -> (B, Hkv, n_rep*S, Dh).
    scale = 1.0 / math.sqrt(head_dim)
    q = (xq.astype(jnp.float32) * scale).astype(jnp.bfloat16)
    q = q.reshape(B, S, n_kv_heads, n_rep, head_dim)
    q = jnp.transpose(q, (0, 2, 3, 1, 4)).reshape(B, n_kv_heads, n_rep * S, head_dim)

    kv_len = start_pos + S
    attn = pallas_flash_attention(q, cache_k, cache_v, kv_len)   # (B,Hkv,Sq,Dh) bf16

    # Back to the (B*S, Hq*Dh) slab the wo GEMM consumes (head order g*n_rep + r).
    attn = attn.reshape(B, n_kv_heads, n_rep, S, head_dim)
    attn = jnp.transpose(attn, (0, 3, 1, 2, 4)).reshape(B * S, n_q)

    out = pallas_linear(attn, params["wo_t"], out_dtype=jnp.float32)
    return out.reshape(B, S, dim), cache_k, cache_v


# ------------------------------ pure-JAX reference --------------------------- #
def reference_forward(x, start_pos, cos, sin, raw, cache_k, cache_v,
                      n_heads, n_kv_heads):
    B, S, dim = x.shape
    head_dim = dim // n_heads
    n_rep = n_heads // n_kv_heads
    T = start_pos + S
    xq = (x @ raw["wq"].T).reshape(B, S, n_heads, head_dim)
    xk = (x @ raw["wk"].T).reshape(B, S, n_kv_heads, head_dim)
    xv = (x @ raw["wv"].T).reshape(B, S, n_kv_heads, head_dim)
    xq = apply_rotary_embeddings(xq, cos, sin)
    xk = apply_rotary_embeddings(xk, cos, sin)
    cache_k = jax.lax.dynamic_update_slice(cache_k, xk, (0, start_pos, 0, 0))
    cache_v = jax.lax.dynamic_update_slice(cache_v, xv, (0, start_pos, 0, 0))
    keys = jnp.repeat(cache_k[:B, :T], n_rep, axis=2)     # (B, T, Hq, Dh)
    values = jnp.repeat(cache_v[:B, :T], n_rep, axis=2)
    q = jnp.transpose(xq, (0, 2, 1, 3))
    k = jnp.transpose(keys, (0, 2, 1, 3))
    v = jnp.transpose(values, (0, 2, 1, 3))
    s = jnp.einsum("bhsd,bhtd->bhst", q, k) / math.sqrt(head_dim)
    p = jax.nn.softmax(s, axis=-1)
    o = jnp.einsum("bhst,bhtd->bhsd", p, v)
    o = jnp.transpose(o, (0, 2, 1, 3)).reshape(B, S, n_heads * head_dim)
    return o @ raw["wo"].T


# ----------------------------------- main ------------------------------------ #
if __name__ == "__main__":
    B, S, dim = 2, 8, 32
    n_heads, n_kv_heads = 4, 2
    head_dim = dim // n_heads            # 8
    max_batch, max_seq = 2, 16
    start_pos = 4

    key = jax.random.PRNGKey(0)
    kx, kq, kk, kv_, ko = jax.random.split(key, 5)
    x = jax.random.normal(kx, (B, S, dim), jnp.float32)

    # nn.Linear weight shapes (out_features, in_features), deterministic init.
    raw = {
        "wq": jax.random.normal(kq, (n_heads * head_dim, dim), jnp.float32) * 0.05,
        "wk": jax.random.normal(kk, (n_kv_heads * head_dim, dim), jnp.float32) * 0.05,
        "wv": jax.random.normal(kv_, (n_kv_heads * head_dim, dim), jnp.float32) * 0.05,
        "wo": jax.random.normal(ko, (dim, n_heads * head_dim), jnp.float32) * 0.05,
    }
    params = prepare_params(raw)   # fused, transposed, bf16 — done ONCE at load

    # Rotary frequencies for positions [start_pos, start_pos + S).
    inv_freq = 1.0 / (
        10000.0 ** (jnp.arange(0, head_dim, 2, dtype=jnp.float32) / head_dim)
    )
    pos = jnp.arange(start_pos, start_pos + S, dtype=jnp.float32)
    angles = pos[:, None] * inv_freq[None, :]          # (S, head_dim // 2)
    cos, sin = jnp.cos(angles), jnp.sin(angles)

    # Pure-JAX f32 reference with the canonical (max_b, max_s, Hkv, Dh) cache.
    ref_ck = jnp.zeros((max_batch, max_seq, n_kv_heads, head_dim), jnp.float32)
    ref_cv = jnp.zeros_like(ref_ck)
    ref = jax.block_until_ready(
        reference_forward(x, start_pos, cos, sin, raw, ref_ck, ref_cv,
                          n_heads, n_kv_heads))

    # Pallas path: persistent bf16 cache in (max_b, Hkv, max_s, Dh) layout.
    cache_k = jnp.zeros((max_batch, n_kv_heads, max_seq, head_dim), jnp.bfloat16)
    cache_v = jnp.zeros_like(cache_k)
    out, cache_k, cache_v = self_attention_forward(
        x, jnp.int32(start_pos), cos, sin, params, cache_k, cache_v,
        n_heads, n_kv_heads)
    out = jax.block_until_ready(out)

    assert out.shape == (B, S, dim)
    err = float(jnp.max(jnp.abs(out - ref)))
    assert err < 5e-2, f"max abs error too large: {err}"
    print("KERNEL_OK")
</pallas_src>

<mosaic_0001>
module attributes {stable_mosaic.version = 11 : i64} {
  func.func @_matmul_kernel(%arg0: i32, %arg1: i32, %arg2: i32, %arg3: memref<16x32xbf16, #tpu.memory_space<vmem>>, %arg4: memref<32x64xbf16, #tpu.memory_space<vmem>>, %arg5: memref<16x64xbf16, #tpu.memory_space<vmem>>, %arg6: memref<16x64xf32, #tpu.memory_space<vmem>>) attributes {dimension_semantics = [#tpu.dimension_semantics<parallel>, #tpu.dimension_semantics<parallel>, #tpu.dimension_semantics<arbitrary>], iteration_bounds = array<i64: 1, 1, 1>, scalar_prefetch = 0 : i64, scratch_operands = 1 : i64, tpu.core_type = #tpu.core_type<tc>, window_params = [{transform_indices = @transform_0, window_bounds = array<i64: 16, 32>}, {transform_indices = @transform_1, window_bounds = array<i64: 32, 64>}, {transform_indices = @transform_2, window_bounds = array<i64: 16, 64>}]} {
    %c0_i32 = arith.constant 0 : i32
    %0 = arith.cmpi eq, %arg2, %c0_i32 : i32
    %1 = arith.extui %0 : i1 to i32
    %c0_i32_0 = arith.constant 0 : i32
    %2 = arith.cmpi ne, %1, %c0_i32_0 : i32
    scf.if %2 {
      %cst_10 = arith.constant 0.000000e+00 : f32
      %12 = vector.broadcast %cst_10 : f32 to vector<16x64xf32>
      %c0_11 = arith.constant 0 : index
      %c0_12 = arith.constant 0 : index
      %13 = vector.load %arg6[%c0_11, %c0_12] : memref<16x64xf32, #tpu.memory_space<vmem>>, vector<16x64xf32>
      tpu.vector_store %arg6[%c0_11, %c0_12], %12 {strides = array<i32>} : memref<16x64xf32, #tpu.memory_space<vmem>>, vector<16x64xf32>,
    } else {
    }
    %c0 = arith.constant 0 : index
    %c0_1 = arith.constant 0 : index
    %3 = vector.load %arg6[%c0, %c0_1] : memref<16x64xf32, #tpu.memory_space<vmem>>, vector<16x64xf32>
    %c0_2 = arith.constant 0 : index
    %c0_3 = arith.constant 0 : index
    %4 = vector.load %arg3[%c0_2, %c0_3] : memref<16x32xbf16, #tpu.memory_space<vmem>>, vector<16x32xbf16>
    %c0_4 = arith.constant 0 : index
    %c0_5 = arith.constant 0 : index
    %5 = vector.load %arg4[%c0_4, %c0_5] : memref<32x64xbf16, #tpu.memory_space<vmem>>, vector<32x64xbf16>
    %cst = arith.constant dense<0.000000e+00> : vector<16x64xf32>
    %6 = tpu.matmul %4, %5, %cst {dimension_numbers = #tpu.dot_dimension_numbers<[1], [0], [0], [1], [0, 0, 1, 1], [], []>} : vector<16x32xbf16>, vector<32x64xbf16>, vector<16x64xf32> -> vector<16x64xf32>
    %7 = arith.addf %3, %6 : vector<16x64xf32>
    %c0_6 = arith.constant 0 : index
    %c0_7 = arith.constant 0 : index
    %8 = vector.load %arg6[%c0_6, %c0_7] : memref<16x64xf32, #tpu.memory_space<vmem>>, vector<16x64xf32>
    tpu.vector_store %arg6[%c0_6, %c0_7], %7 {strides = array<i32>} : memref<16x64xf32, #tpu.memory_space<vmem>>, vector<16x64xf32>,
    %c0_i32_8 = arith.constant 0 : i32
    %9 = arith.cmpi eq, %arg2, %c0_i32_8 : i32
    %10 = arith.extui %9 : i1 to i32
    %c0_i32_9 = arith.constant 0 : i32
    %11 = arith.cmpi ne, %10, %c0_i32_9 : i32
    scf.if %11 {
      %c0_10 = arith.constant 0 : index
      %c0_11 = arith.constant 0 : index
      %12 = vector.load %arg6[%c0_10, %c0_11] : memref<16x64xf32, #tpu.memory_space<vmem>>, vector<16x64xf32>
      %13 = arith.truncf %12 : vector<16x64xf32> to vector<16x64xbf16>
      %c0_12 = arith.constant 0 : index
      %c0_13 = arith.constant 0 : index
      %14 = vector.load %arg5[%c0_12, %c0_13] : memref<16x64xbf16, #tpu.memory_space<vmem>>, vector<16x64xbf16>
      tpu.vector_store %arg5[%c0_12, %c0_13], %13 {strides = array<i32>} : memref<16x64xbf16, #tpu.memory_space<vmem>>, vector<16x64xbf16>,
    } else {
    }
    return
  }
  func.func @transform_0(%arg0: i32, %arg1: i32, %arg2: i32) -> (i32, i32) {
    %c0_i32 = arith.constant 0 : i32
    return %arg0, %arg2 : i32, i32
  }
  func.func @transform_1(%arg0: i32, %arg1: i32, %arg2: i32) -> (i32, i32) {
    %c0_i32 = arith.constant 0 : i32
    return %arg2, %arg1 : i32, i32
  }
  func.func @transform_2(%arg0: i32, %arg1: i32, %arg2: i32) -> (i32, i32) {
    %c0_i32 = arith.constant 0 : i32
    return %arg0, %arg1 : i32, i32
  }
}

module attributes {stable_mosaic.version = 11 : i64} {
  func.func @_flash_attn_kernel(%arg0: i32, %arg1: i32, %arg2: i32, %arg3: memref<1xi32, #tpu.memory_space<smem>>, %arg4: memref<1x1x16x8xbf16, #tpu.memory_space<vmem>>, %arg5: memref<1x1x16x8xbf16, #tpu.memory_space<vmem>>, %arg6: memref<1x1x16x8xbf16, #tpu.memory_space<vmem>>, %arg7: memref<1x1x16x8xbf16, #tpu.memory_space<vmem>>, %arg8: memref<16x1xf32, #tpu.memory_space<vmem>>, %arg9: memref<16x1xf32, #tpu.memory_space<vmem>>, %arg10: memref<16x8xf32, #tpu.memory_space<vmem>>) attributes {dimension_semantics = [#tpu.dimension_semantics<parallel>, #tpu.dimension_semantics<parallel>, #tpu.dimension_semantics<arbitrary>], iteration_bounds = array<i64: 2, 2, 1>, scalar_prefetch = 1 : i64, scratch_operands = 3 : i64, tpu.core_type = #tpu.core_type<tc>, window_params = [{transform_indices = @transform_0, window_bounds = array<i64: 1, 1, 16, 8>}, {transform_indices = @transform_1, window_bounds = array<i64: 1, 1, 16, 8>}, {transform_indices = @transform_2, window_bounds = array<i64: 1, 1, 16, 8>}, {transform_indices = @transform_3, window_bounds = array<i64: 1, 1, 16, 8>}]} {
    %c0_i32 = arith.constant 0 : i32
    %0 = arith.cmpi eq, %arg2, %c0_i32 : i32
    %1 = arith.extui %0 : i1 to i32
    %c0_i32_0 = arith.constant 0 : i32
    %2 = arith.cmpi ne, %1, %c0_i32_0 : i32
    scf.if %2 {
      %cst = arith.constant 0xFF800000 : f32
      %11 = vector.broadcast %cst : f32 to vector<16x1xf32>
      %c0_4 = arith.constant 0 : index
      %c0_5 = arith.constant 0 : index
      %12 = vector.load %arg8[%c0_4, %c0_5] : memref<16x1xf32, #tpu.memory_space<vmem>>, vector<16x1xf32>
      tpu.vector_store %arg8[%c0_4, %c0_5], %11 {strides = array<i32>} : memref<16x1xf32, #tpu.memory_space<vmem>>, vector<16x1xf32>,
      %cst_6 = arith.constant 0.000000e+00 : f32
      %13 = vector.broadcast %cst_6 : f32 to vector<16x1xf32>
      %c0_7 = arith.constant 0 : index
      %c0_8 = arith.constant 0 : index
      %14 = vector.load %arg9[%c0_7, %c0_8] : memref<16x1xf32, #tpu.memory_space<vmem>>, vector<16x1xf32>
      tpu.vector_store %arg9[%c0_7, %c0_8], %13 {strides = array<i32>} : memref<16x1xf32, #tpu.memory_space<vmem>>, vector<16x1xf32>,
      %cst_9 = arith.constant 0.000000e+00 : f32
      %15 = vector.broadcast %cst_9 : f32 to vector<16x8xf32>
      %c0_10 = arith.constant 0 : index
      %c0_11 = arith.constant 0 : index
      %16 = vector.load %arg10[%c0_10, %c0_11] : memref<16x8xf32, #tpu.memory_space<vmem>>, vector<16x8xf32>
      tpu.vector_store %arg10[%c0_10, %c0_11], %15 {strides = array<i32>} : memref<16x8xf32, #tpu.memory_space<vmem>>, vector<16x8xf32>,
    } else {
    }
    %c0 = arith.constant 0 : index
    %3 = memref.load %arg3[%c0] : memref<1xi32, #tpu.memory_space<smem>>
    %c16_i32 = arith.constant 16 : i32
    %4 = arith.muli %arg2, %c16_i32 : i32
    %5 = arith.cmpi slt, %4, %3 : i32
    %6 = arith.extui %5 : i1 to i32
    %c0_i32_1 = arith.constant 0 : i32
    %7 = arith.cmpi ne, %6, %c0_i32_1 : i32
    scf.if %7 {
      %c0_4 = arith.constant 0 : index
      %c0_5 = arith.constant 0 : index
      %c0_6 = arith.constant 0 : index
      %c0_7 = arith.constant 0 : index
      %11 = vector.load %arg4[%c0_4, %c0_5, %c0_6, %c0_7] : memref<1x1x16x8xbf16, #tpu.memory_space<vmem>>, vector<1x1x16x8xbf16>
      %12 = vector.shape_cast %11 : vector<1x1x16x8xbf16> to vector<16x8xbf16>
      %c0_8 = arith.constant 0 : index
      %c0_9 = arith.constant 0 : index
      %c0_10 = arith.constant 0 : index
      %c0_11 = arith.constant 0 : index
      %13 = vector.load %arg5[%c0_8, %c0_9, %c0_10, %c0_11] : memref<1x1x16x8xbf16, #tpu.memory_space<vmem>>, vector<1x1x16x8xbf16>
      %14 = vector.shape_cast %13 : vector<1x1x16x8xbf16> to vector<16x8xbf16>
      %c0_12 = arith.constant 0 : index
      %c0_13 = arith.constant 0 : index
      %c0_14 = arith.constant 0 : index
      %c0_15 = arith.constant 0 : index
      %15 = vector.load %arg6[%c0_12, %c0_13, %c0_14, %c0_15] : memref<1x1x16x8xbf16, #tpu.memory_space<vmem>>, vector<1x1x16x8xbf16>
      %16 = vector.shape_cast %15 : vector<1x1x16x8xbf16> to vector<16x8xbf16>
      %cst = arith.constant dense<0.000000e+00> : vector<16x16xf32>
      %17 = tpu.matmul %12, %14, %cst {dimension_numbers = #tpu.dot_dimension_numbers<[1], [1], [0], [0], [0, 0, 1, 0], [], []>} : vector<16x8xbf16>, vector<16x8xbf16>, vector<16x16xf32> -> vector<16x16xf32>
      %18 = tpu.iota {dimensions = array<i32: 1>} : vector<16x16xi32>
      %19 = vector.broadcast %4 : i32 to vector<16x16xi32>
      %20 = arith.addi %19, %18 : vector<16x16xi32>
      %21 = vector.broadcast %3 : i32 to vector<16x16xi32>
      %22 = arith.cmpi slt, %20, %21 : vector<16x16xi32>
      %cst_16 = arith.constant 0xFF800000 : f32
      %23 = vector.broadcast %cst_16 : f32 to vector<16x16xf32>
      %24 = arith.select %22, %17, %23 : vector<16x16xi1>, vector<16x16xf32>
      %c0_17 = arith.constant 0 : index
      %c0_18 = arith.constant 0 : index
      %25 = vector.load %arg8[%c0_17, %c0_18] : memref<16x1xf32, #tpu.memory_space<vmem>>, vector<16x1xf32>
      %cst_19 = arith.constant dense<0xFF800000> : vector<16xf32>
      %26 = vector.multi_reduction <maximumf>, %24, %cst_19 [1] : vector<16x16xf32> to vector<16xf32>
      %27 = vector.shape_cast %26 : vector<16xf32> to vector<16x1xf32>
      %28 = arith.maximumf %25, %27 : vector<16x1xf32>
      %29 = arith.subf %25, %28 : vector<16x1xf32>
      %30 = math.exp %29 : vector<16x1xf32>
      %31 = vector.broadcast %28 : vector<16x1xf32> to vector<16x16xf32>
      %32 = arith.subf %24, %31 : vector<16x16xf32>
      %33 = math.exp %32 : vector<16x16xf32>
      %c0_20 = arith.constant 0 : index
      %c0_21 = arith.constant 0 : index
      %34 = vector.load %arg9[%c0_20, %c0_21] : memref<16x1xf32, #tpu.memory_space<vmem>>, vector<16x1xf32>
      %35 = arith.mulf %30, %34 : vector<16x1xf32>
      %cst_22 = arith.constant dense<0.000000e+00> : vector<16xf32>
      %36 = vector.multi_reduction <add>, %33, %cst_22 [1] : vector<16x16xf32> to vector<16xf32>
      %37 = vector.shape_cast %36 : vector<16xf32> to vector<16x1xf32>
      %38 = arith.addf %35, %37 : vector<16x1xf32>
      %c0_23 = arith.constant 0 : index
      %c0_24 = arith.constant 0 : index
      %39 = vector.load %arg9[%c0_23, %c0_24] : memref<16x1xf32, #tpu.memory_space<vmem>>, vector<16x1xf32>
      tpu.vector_store %arg9[%c0_23, %c0_24], %38 {strides = array<i32>} : memref<16x1xf32, #tpu.memory_space<vmem>>, vector<16x1xf32>,
      %c0_25 = arith.constant 0 : index
      %c0_26 = arith.constant 0 : index
      %40 = vector.load %arg10[%c0_25, %c0_26] : memref<16x8xf32, #tpu.memory_space<vmem>>, vector<16x8xf32>
      %41 = vector.broadcast %30 : vector<16x1xf32> to vector<16x8xf32>
      %42 = arith.mulf %41, %40 : vector<16x8xf32>
      %43 = arith.truncf %33 : vector<16x16xf32> to vector<16x16xbf16>
      %cst_27 = arith.constant dense<0.000000e+00> : vector<16x8xf32>
      %44 = tpu.matmul %43, %16, %cst_27 {dimension_numbers = #tpu.dot_dimension_numbers<[1], [0], [0], [1], [0, 0, 1, 1], [], []>} : vector<16x16xbf16>, vector<16x8xbf16>, vector<16x8xf32> -> vector<16x8xf32>
      %45 = arith.addf %42, %44 : vector<16x8xf32>
      %c0_28 = arith.constant 0 : index
      %c0_29 = arith.constant 0 : index
      %46 = vector.load %arg10[%c0_28, %c0_29] : memref<16x8xf32, #tpu.memory_space<vmem>>, vector<16x8xf32>
      tpu.vector_store %arg10[%c0_28, %c0_29], %45 {strides = array<i32>} : memref<16x8xf32, #tpu.memory_space<vmem>>, vector<16x8xf32>,
      %c0_30 = arith.constant 0 : index
      %c0_31 = arith.constant 0 : index
      %47 = vector.load %arg8[%c0_30, %c0_31] : memref<16x1xf32, #tpu.memory_space<vmem>>, vector<16x1xf32>
      tpu.vector_store %arg8[%c0_30, %c0_31], %28 {strides = array<i32>} : memref<16x1xf32, #tpu.memory_space<vmem>>, vector<16x1xf32>,
    } else {
    }
    %c0_i32_2 = arith.constant 0 : i32
    %8 = arith.cmpi eq, %arg2, %c0_i32_2 : i32
    %9 = arith.extui %8 : i1 to i32
    %c0_i32_3 = arith.constant 0 : i32
    %10 = arith.cmpi ne, %9, %c0_i32_3 : i32
    scf.if %10 {
      %c0_4 = arith.constant 0 : index
      %c0_5 = arith.constant 0 : index
      %11 = vector.load %arg10[%c0_4, %c0_5] : memref<16x8xf32, #tpu.memory_space<vmem>>, vector<16x8xf32>
      %c0_6 = arith.constant 0 : index
      %c0_7 = arith.constant 0 : index
      %12 = vector.load %arg9[%c0_6, %c0_7] : memref<16x1xf32, #tpu.memory_space<vmem>>, vector<16x1xf32>
      %13 = tpu.reciprocal %12 {approx = true} : vector<16x1xf32> -> vector<16x1xf32>
      %14 = vector.broadcast %13 : vector<16x1xf32> to vector<16x8xf32>
      %15 = arith.mulf %11, %14 : vector<16x8xf32>
      %16 = arith.truncf %15 : vector<16x8xf32> to vector<16x8xbf16>
      %c0_8 = arith.constant 0 : index
      %c0_9 = arith.constant 0 : index
      %c0_10 = arith.constant 0 : index
      %c0_11 = arith.constant 0 : index
      %17 = vector.load %arg7[%c0_8, %c0_9, %c0_10, %c0_11] : memref<1x1x16x8xbf16, #tpu.memory_space<vmem>>, vector<1x1x16x8xbf16>
      %18 = vector.shape_cast %17 : vector<1x1x16x8xbf16> to vector<16x8xbf16>
      %19 = vector.shape_cast %16 : vector<16x8xbf16> to vector<1x1x16x8xbf16>
      tpu.vector_store %arg7[%c0_8, %c0_9, %c0_10, %c0_11], %19 {strides = array<i32>} : memref<1x1x16x8xbf16, #tpu.memory_space<vmem>>, vector<1x1x16x8xbf16>,
    } else {
    }
    return
  }
  func.func @transform_0(%arg0: i32, %arg1: i32, %arg2: i32, %arg3: memref<1xi32, #tpu.memory_space<smem>>) -> (i32, i32, i32, i32) {
    %c0_i32 = arith.constant 0 : i32
    %c0_i32_0 = arith.constant 0 : i32
    %c0_i32_1 = arith.constant 0 : i32
    return %arg0, %arg1, %c0_i32, %c0_i32_0 : i32, i32, i32, i32
  }
  func.func @transform_1(%arg0: i32, %arg1: i32, %arg2: i32, %arg3: memref<1xi32, #tpu.memory_space<smem>>) -> (i32, i32, i32, i32) {
    %c0_i32 = arith.constant 0 : i32
    %c0_i32_0 = arith.constant 0 : i32
    return %arg0, %arg1, %arg2, %c0_i32 : i32, i32, i32, i32
  }
  func.func @transform_2(%arg0: i32, %arg1: i32, %arg2: i32, %arg3: memref<1xi32, #tpu.memory_space<smem>>) -> (i32, i32, i32, i32) {
    %c0_i32 = arith.constant 0 : i32
    %c0_i32_0 = arith.constant 0 : i32
    return %arg0, %arg1, %arg2, %c0_i32 : i32, i32, i32, i32
  }
  func.func @transform_3(%arg0: i32, %arg1: i32, %arg2: i32, %arg3: memref<1xi32, #tpu.memory_space<smem>>) -> (i32, i32, i32, i32) {
    %c0_i32 = arith.constant 0 : i32
    %c0_i32_0 = arith.constant 0 : i32
    %c0_i32_1 = arith.constant 0 : i32
    return %arg0, %arg1, %c0_i32, %c0_i32_0 : i32, i32, i32, i32
  }
}

module attributes {stable_mosaic.version = 11 : i64} {
  func.func @_matmul_kernel(%arg0: i32, %arg1: i32, %arg2: i32, %arg3: memref<16x32xbf16, #tpu.memory_space<vmem>>, %arg4: memref<32x32xbf16, #tpu.memory_space<vmem>>, %arg5: memref<16x32xf32, #tpu.memory_space<vmem>>, %arg6: memref<16x32xf32, #tpu.memory_space<vmem>>) attributes {dimension_semantics = [#tpu.dimension_semantics<parallel>, #tpu.dimension_semantics<parallel>, #tpu.dimension_semantics<arbitrary>], iteration_bounds = array<i64: 1, 1, 1>, scalar_prefetch = 0 : i64, scratch_operands = 1 : i64, tpu.core_type = #tpu.core_type<tc>, window_params = [{transform_indices = @transform_0, window_bounds = array<i64: 16, 32>}, {transform_indices = @transform_1, window_bounds = array<i64: 32, 32>}, {transform_indices = @transform_2, window_bounds = array<i64: 16, 32>}]} {
    %c0_i32 = arith.constant 0 : i32
    %0 = arith.cmpi eq, %arg2, %c0_i32 : i32
    %1 = arith.extui %0 : i1 to i32
    %c0_i32_0 = arith.constant 0 : i32
    %2 = arith.cmpi ne, %1, %c0_i32_0 : i32
    scf.if %2 {
      %cst_10 = arith.constant 0.000000e+00 : f32
      %12 = vector.broadcast %cst_10 : f32 to vector<16x32xf32>
      %c0_11 = arith.constant 0 : index
      %c0_12 = arith.constant 0 : index
      %13 = vector.load %arg6[%c0_11, %c0_12] : memref<16x32xf32, #tpu.memory_space<vmem>>, vector<16x32xf32>
      tpu.vector_store %arg6[%c0_11, %c0_12], %12 {strides = array<i32>} : memref<16x32xf32, #tpu.memory_space<vmem>>, vector<16x32xf32>,
    } else {
    }
    %c0 = arith.constant 0 : index
    %c0_1 = arith.constant 0 : index
    %3 = vector.load %arg6[%c0, %c0_1] : memref<16x32xf32, #tpu.memory_space<vmem>>, vector<16x32xf32>
    %c0_2 = arith.constant 0 : index
    %c0_3 = arith.constant 0 : index
    %4 = vector.load %arg3[%c0_2, %c0_3] : memref<16x32xbf16, #tpu.memory_space<vmem>>, vector<16x32xbf16>
    %c0_4 = arith.constant 0 : index
    %c0_5 = arith.constant 0 : index
    %5 = vector.load %arg4[%c0_4, %c0_5] : memref<32x32xbf16, #tpu.memory_space<vmem>>, vector<32x32xbf16>
    %cst = arith.constant dense<0.000000e+00> : vector<16x32xf32>
    %6 = tpu.matmul %4, %5, %cst {dimension_numbers = #tpu.dot_dimension_numbers<[1], [0], [0], [1], [0, 0, 1, 1], [], []>} : vector<16x32xbf16>, vector<32x32xbf16>, vector<16x32xf32> -> vector<16x32xf32>
    %7 = arith.addf %3, %6 : vector<16x32xf32>
    %c0_6 = arith.constant 0 : index
    %c0_7 = arith.constant 0 : index
    %8 = vector.load %arg6[%c0_6, %c0_7] : memref<16x32xf32, #tpu.memory_space<vmem>>, vector<16x32xf32>
    tpu.vector_store %arg6[%c0_6, %c0_7], %7 {strides = array<i32>} : memref<16x32xf32, #tpu.memory_space<vmem>>, vector<16x32xf32>,
    %c0_i32_8 = arith.constant 0 : i32
    %9 = arith.cmpi eq, %arg2, %c0_i32_8 : i32
    %10 = arith.extui %9 : i1 to i32
    %c0_i32_9 = arith.constant 0 : i32
    %11 = arith.cmpi ne, %10, %c0_i32_9 : i32
    scf.if %11 {
      %c0_10 = arith.constant 0 : index
      %c0_11 = arith.constant 0 : index
      %12 = vector.load %arg6[%c0_10, %c0_11] : memref<16x32xf32, #tpu.memory_space<vmem>>, vector<16x32xf32>
      %c0_12 = arith.constant 0 : index
      %c0_13 = arith.constant 0 : index
      %13 = vector.load %arg5[%c0_12, %c0_13] : memref<16x32xf32, #tpu.memory_space<vmem>>, vector<16x32xf32>
      tpu.vector_store %arg5[%c0_12, %c0_13], %12 {strides = array<i32>} : memref<16x32xf32, #tpu.memory_space<vmem>>, vector<16x32xf32>,
    } else {
    }
    return
  }
  func.func @transform_0(%arg0: i32, %arg1: i32, %arg2: i32) -> (i32, i32) {
    %c0_i32 = arith.constant 0 : i32
    return %arg0, %arg2 : i32, i32
  }
  func.func @transform_1(%arg0: i32, %arg1: i32, %arg2: i32) -> (i32, i32) {
    %c0_i32 = arith.constant 0 : i32
    return %arg2, %arg1 : i32, i32
  }
  func.func @transform_2(%arg0: i32, %arg1: i32, %arg2: i32) -> (i32, i32) {
    %c0_i32 = arith.constant 0 : i32
    return %arg0, %arg1 : i32, i32
  }
}

</mosaic_0001>

<bundles_post_ra>
// kernel: self_attention_forward.3
= control target key start
LH: loop header
LB: loop body
LE: loop exit
PB: predicated region body
PF: predicated region fallthrough
CT: control target
= control target key end

     0   :  { %vm16_vm0 = vcmask 523264   ;;  %v98_v1 = vmov 0.0   ;;  %vm44_vm1 = vcmask 261120   ;;  %vm74_vm2 = vcmask 519168   ;;  %s133_s1 = inlined_call_operand.vmem [shape: bf16[32,64], index: 1, kind: input, shape index: {}]   ;;  %s134_s0 = inlined_call_operand.vmem [shape: bf16[16,32], index: 0, kind: input, shape index: {}]   ;;  %s135_s2 = inlined_call_operand.vmem [shape: bf16[16,64], index: 2, kind: output, shape index: {}]  }
   0x1   :  { %v96_v0 = vld [vmem:[%s133_s1 + $0x8] sm:$0xff]  ;;  %17 = vst.msk [vmem:[#allocation2] sm:$0xff] %vm16_vm0, %v98_v1  ;;  %v95_v2 = vld [vmem:[%s133_s1] sm:$0xff] }
   0x2   :  { %18 = vst.msk [vmem:[#allocation2 + $0x8] sm:$0xff] %vm16_vm0, %v98_v1  ;;  %54 = vmatpush.bf16.msra.mxu0 %v96_v0  ;;  %v94_v3 = vld [vmem:[%s134_s0] sm:$0xff] }
   0x6   :  { %55 = vmatpush.bf16.msra.mxu0 %v95_v2 }
   0x8   :  { %v19_v4 = vld [vmem:[#allocation2] sm:$0xff] }
   0x9   :  { %93 = vmatmul.msk.bf16.vlgmr.msra.gmra.mxu0 %vm44_vm1, %v94_v3  ;;  %v20_v7 = vld [vmem:[#allocation2 + $0x8] sm:$0xff] }
  0x86   :  { %v57_v5 = vpop.f32.mrf.mxu0 }
  0x87   :  { %v62_v6 = vadd.f32 %v57_v5, %v19_v4 }
  0x89   :  { %65 = vst.msk [vmem:[#allocation2] sm:$0xff] %vm16_vm0, %v62_v6 }
  0x8e   :  { %v59_v8 = vpop.f32.mrf.mxu0 }
  0x8f   :  { %v63_v9 = vadd.f32 %v59_v8, %v20_v7 }
  0x90   :  { %v70_v10 = vld [vmem:[#allocation2] sm:$0xff] }
  0x91   :  { %v72_v11 = vpack.c.bf16 %v70_v10, %v70_v10  ;;  %66 = vst.msk [vmem:[#allocation2 + $0x8] sm:$0xff] %vm16_vm0, %v63_v9 }
  0x93   :  { %75 = vst.msk [vmem:[%s135_s2] sm:$0xf] %vm74_vm2, %v72_v11 }
  0x98   :  { %v71_v12 = vld [vmem:[#allocation2 + $0x8] sm:$0xff] }
  0x99   :  { %v73_v13 = vpack.c.bf16 %v71_v12, %v71_v12 }
  0x9b   :  { %76 = vst.msk [vmem:[%s135_s2 + $0x4] sm:$0xf] %vm74_vm2, %v73_v13 }

// kernel: self_attention_forward.5
= control target key start
LH: loop header
LB: loop body
LE: loop exit
PB: predicated region body
PF: predicated region fallthrough
CT: control target
= control target key end

     0   :  { %vm17_vm0 = vcmask 261120   ;;  %v138_v1 = vmov 0.0   ;;  %s176_s0 = inlined_call_operand.vmem [shape: bf16[16,32], index: 0, kind: input, shape index: {}]   ;;  %s177_s1 = inlined_call_operand.vmem [shape: bf16[32,32], index: 1, kind: input, shape index: {}]   ;;  %s178_s2 = inlined_call_operand.hbm [shape: f32[16,32], index: 2, kind: output, shape index: {}]  }
   0x1   :  { %v107_v0 = vld [vmem:[%s177_s1 + $0x8] sm:$0xff]  ;;  %18 = vst.msk [vmem:[#allocation2] sm:$0xff] %vm17_vm0, %v138_v1 }
   0x2   :  { %7 = vsyncpa [#allocation4], 0  ;;  %55 = vmatpush.bf16.msra.mxu0 %v107_v0  ;;  %v106_v2 = vld [vmem:[%s177_s1] sm:$0xff]  ;;  %19 = vst.msk [vmem:[#allocation2 + $0x8] sm:$0xff] %vm17_vm0, %v138_v1  ;;  %s139_s1 = smov [#allocation3]   ;;  %s80_s17 = sshll.u32 %s178_s2, 4  ;;  %s81_s17 = int_to_ptr.hbm [resolvable:$true] %s80_s17 }
   0x3   :  { %v105_v3 = vld [vmem:[%s176_s0] sm:$0xff]  ;;  %s78_s15 = sshll.u32 %s139_s1, 4  ;;  %s140_s18 = smov 128   ;;  %s79_s15 = int_to_ptr.vmem [resolvable:$true] %s78_s15 }
   0x4   :  { %s141_s19 = smov 8  }
   0x6   :  { %56 = vmatpush.bf16.msra.mxu0 %v106_v2 }
   0x8   :  { %v20_v4 = vld [vmem:[#allocation2] sm:$0xff] }
   0x9   :  { %104 = vmatmul.msk.bf16.vlgmr.msra.gmra.mxu0 %vm17_vm0, %v105_v3  ;;  %v21_v7 = vld [vmem:[#allocation2 + $0x8] sm:$0xff] }
  0x86   :  { %v58_v5 = vpop.f32.mrf.mxu0 }
  0x87   :  { %v63_v6 = vadd.f32 %v58_v5, %v20_v4 }
  0x89   :  { %65 = vst.msk [vmem:[#allocation2] sm:$0xff] %vm17_vm0, %v63_v6 }
  0x8e   :  { %v60_v8 = vpop.f32.mrf.mxu0 }
  0x8f   :  { %v64_v9 = vadd.f32 %v60_v8, %v21_v7 }
  0x90   :  { %v70_v10 = vld [vmem:[#allocation2] sm:$0xff] }
  0x91   :  { %66 = vst.msk [vmem:[#allocation2 + $0x8] sm:$0xff] %vm17_vm0, %v64_v9 }
  0x92   :  { %72 = vst.msk [vmem:[#allocation3] sm:$0xff] %vm17_vm0, %v70_v10 }
  0x98   :  { %v71_v11 = vld [vmem:[#allocation2 + $0x8] sm:$0xff] }
  0x99   :  { %73 = vst.msk [vmem:[#allocation3 + $0x8] sm:$0xff] %vm17_vm0, %v71_v11 }
  0x9a   :  { %86 = dma.vmem_to_hbm [thread:$0]  %s79_s15, 256, %s81_s17, [#allocation4], %s140_s18, %s140_s18, %s141_s19  }
  0x9b   :  { %136 = dma.done.wait [#allocation4], 256  }
  0x9c   :  { %137 = vsyncadd [#allocation4], 4294967040 }
  0x9d   :  { %91 = vsyncpa [#allocation4], 1 }

// kernel: self_attention_forward.4
= control target key start
LH: loop header
LB: loop body
LE: loop exit
PB: predicated region body
PF: predicated region fallthrough
CT: control target
= control target key end

     0   :  { %s814_s17 = smov 0   ;;  %s816_s18 = smov 0   ;;  %s905_s0 = inlined_call_operand.<no memory space> [shape: s32[1], index: 0, kind: input, shape index: {}]   ;;  %s906_s1 = inlined_call_operand.vmem [shape: bf16[2,2,16,8], index: 1, kind: input, shape index: {}]   ;;  %s907_s2 = inlined_call_operand.vmem [shape: bf16[2,2,16,8], index: 2, kind: input, shape index: {}]   ;;  %s908_s3 = inlined_call_operand.vmem [shape: bf16[2,2,16,8], index: 3, kind: input, shape index: {}]   ;;  %s909_s4 = inlined_call_operand.vmem [shape: bf16[2,2,16,8], index: 4, kind: output, shape index: {}]  }
   0x1   :  { %9 = sst [smem:[#allocation6]] %s905_s0  ;;  %s818_s19 = smov 0  }
   0x2   :  { %s820_s20 = smov 0   ;;  %s822_s21 = smov 0  }
   0x3 LB: > { %s30_s0 = sadd.s32 1, %s772_s19  ;;  %s34_s22 = sadd.s32 1, %s776_s20  ;;  %s780_s21 = sphi %s822_s21, %s15_s21   ;;  %s776_s20 = sphi %s820_s20, %s913_s20   ;;  %s772_s19 = sphi %s818_s19, %s912_s19   ;;  %s768_s18 = sphi %s816_s18, %s911_s18   ;;  %s764_s17 = sphi %s814_s17, %s910_s17  }
   0x4   : > { %p32_p0 = scmp.ge.s32.totalorder %s30_s0, 2  ;;  %p648_p1 = scmp.ge.s32.totalorder %s780_s21, 1 }
   0x5   : > { %p212_p2 = scmp.lt.s32.totalorder %s780_s21, 5 }
   0x6   : > { %s915_s0 = smov (%p32_p0, %s30_s0), 0  ;;  %s917_s22 = smov (!%p32_p0, %s34_s22), %s776_s20 }
   0x7   : > { %p213_p3 = pnand %p648_p1, %p212_p2  ;;  %p36_p4 = scmp.ge.s32.totalorder %s917_s22, 2 }
   0x8   : > { %p270_p5 = scmp.lt.s32.totalorder (!%p213_p3), %s768_s18, 1  ;;  %p272_p6 = scmp.lt.s32.totalorder (!%p213_p3), %s764_s17, 1 }
   0x9   : > { %s919_s22 = smov (%p36_p4, %s917_s22), 0  ;;  %216 = sbr.rel (%p213_p3) target bundleno = 689 (0x2b1), region = 32 }
   0xa   : > { %s329_s23 = sld [smem:[#allocation6]] (!%p213_p3) }
   0xe   : > { %vm321_vm0 = vcmask 7168   ;;  %v782_v0 = vmov -inf   ;;  %s921_s18 = smov (!%p270_p5, %s768_s18), 1  ;;  %vm326_vm1 = vcmask 64512   ;;  %s923_s17 = smov (!%p272_p6, %s764_s17), 1  ;;  %v783_v1 = vmov 0.0  }
   0xf   : > { %322 = vst.msk [vmem:[#allocation2] sm:$0xff] %vm321_vm0, %v782_v0  ;;  %s650_s24 = sshll.u32 %s921_s18, 2  ;;  %s649_s25 = sshll.u32 %s923_s17, 1 }
  0x10   : > { %323 = vst.msk [vmem:[#allocation2 + $0x8] sm:$0xff] %vm321_vm0, %v782_v0  ;;  %s276_s26 = sadd.s32 %s650_s24, %s649_s25  ;;  %p662_p7 = scmp.le.s32.totalorder %s329_s23, 0 }
  0x11   : > { %324 = vst.msk [vmem:[#allocation3] sm:$0xff] %vm321_vm0, %v783_v1  ;;  %s850_s27 = sshll.u32 %s276_s26, 2 }
  0x12   : > { %325 = vst.msk [vmem:[#allocation3 + $0x8] sm:$0xff] %vm321_vm0, %v783_v1  ;;  %s278_s30 = scalar_lea.vmem %s906_s1, %s850_s27  ;;  %s291_s7 = scalar_lea.vmem %s907_s2, %s850_s27 }
  0x13   : > { %327 = vst.msk [vmem:[#allocation4] sm:$0xff] %vm326_vm1, %v783_v1  ;;  %s305_s10 = scalar_lea.vmem %s908_s3, %s850_s27  ;;  %s868_s13 = scalar_lea.vmem %s909_s4, %s850_s27 }
  0x14   : > { %328 = vst.msk [vmem:[#allocation4 + $0x8] sm:$0xff] %vm326_vm1, %v783_v1  ;;  %334 = sbr.rel (%p662_p7) target bundleno = 553 (0x229), region = 40 }
  0x19   : > { %v680_v2 = vld [vmem:[%s291_s7] sm:$0xff]  ;;  %v372_v5 = vlaneseq  ;;  %v376_v7 = vstv %s329_s23  ;;  %vm382_vm3 = vcmask 130048   ;;  %v784_v14 = vmov 0   ;;  %v381_v20 = vld [vmem:[#allocation2 + $0x8] sm:$0xff]  ;;  %v413_v39 = vld [vmem:[#allocation3] sm:$0xff] }
  0x1a   : > { %v356_v3 = vsel %vm326_vm1, %v680_v2, 0  ;;  %v679_v4 = vld [vmem:[%s278_s30] sm:$0xff]  ;;  %726 = vset.pattern.permute.xlu1 %v784_v14  ;;  %727 = vset.pattern.permute.xlu2 %v784_v14  ;;  %v414_v43 = vld [vmem:[#allocation3 + $0x8] sm:$0xff] }
  0x1b   : > { %365 = vmatpush.bf16.xpose.msra.mxu0 %v356_v3  ;;  %v373_v6 = vand.u32 127, %v372_v5  ;;  %728 = vset.pattern.permute.xlu0 %v784_v14  ;;  %v380_v15 = vld [vmem:[#allocation2] sm:$0xff]  ;;  %v429_v52 = vld [vmem:[#allocation4 + $0x8] sm:$0xff] }
  0x1c   : > { %v681_v27 = vld [vmem:[%s305_s10] sm:$0xff] }
  0x1d   : > { %vm377_vm2 = vcmp.lt.s32.totalorder %v373_v6, %v376_v7  ;;  %459 = vmatpush.bf16.msra.mxu1 %v681_v27  ;;  %v428_v48 = vld [vmem:[#allocation4] sm:$0xff] }
  0x22   : > { %671 = vmatmul.msk.bf16.vlgmr.msra.gmra.mxu0 %vm326_vm1, %v679_v4 }
  0x9f   : > { %v367_v8 = vpop.f32.mrf.mxu0 }
  0xa0   : > { %v378_v9 = vsel %vm377_vm2, %v367_v8, -inf }
  0xa1   : > { %v383_v10 = vsel %vm382_vm3, %v378_v9, -inf }
  0xa2   : > { %384 = vmax.xlane.f32.xlu0 %v383_v10 }
  0xa7   : > { %v369_v11 = vpop.f32.mrf.mxu0 }
  0xa8   : > { %v379_v12 = vsel %vm377_vm2, %v369_v11, -inf }
  0xa9   : > { %v386_v13 = vsel %vm382_vm3, %v379_v12, -inf }
  0xaa   : > { %387 = vmax.xlane.f32.xlu0 %v386_v13 }
 0x115   : > { %v385_v16 = vpop.xlane.xlu0 %384 }
 0x116   : > { %v389_v17 = vmax.f32 %v380_v15, %v385_v16 }
 0x118   : > { %v391_v18 = vsub.f32 %v380_v15, %v389_v17  ;;  %470 = vst.msk [vmem:[#allocation2] sm:$0xff] %vm321_vm0, %v389_v17  ;;  %399 = vperm.xlu1 %726, %v389_v17  }
 0x11a   : > { %v393_v19 = vmul.f32 1.442695, %v391_v18 }
 0x11c   : > { %729 = vpow2.f32 %v393_v19 }
 0x11d   : > { %v388_v21 = vpop.xlane.xlu0 %387 }
 0x11e   : > { %v390_v22 = vmax.f32 %v381_v20, %v388_v21 }
 0x120   : > { %v392_v23 = vsub.f32 %v381_v20, %v390_v22  ;;  %471 = vst.msk [vmem:[#allocation2 + $0x8] sm:$0xff] %vm321_vm0, %v390_v22  ;;  %404 = vperm.xlu1 %726, %v390_v22  }
 0x122   : > { %v730_v24 = vpop.eup %729  ;;  %v395_v25 = vmul.f32 1.442695, %v392_v23 }
 0x123   : > { %432 = vperm.xlu2 %727, %v730_v24   ;;  %v415_v40 = vmul.f32 %v730_v24, %v413_v39 }
 0x124   : > { %731 = vpow2.f32 %v395_v25 }
 0x12a   : > { %v732_v26 = vpop.eup %731 }
 0x12b   : > { %437 = vperm.xlu2 %727, %v732_v26   ;;  %v416_v44 = vmul.f32 %v732_v26, %v414_v43 }
 0x17d   : > { %v433_v47 = vpop.permute.xlu2 %432 }
 0x17e   : > { %v440_v49 = vmul.f32 %v433_v47, %v428_v48 }
 0x185   : > { %v438_v53 = vpop.permute.xlu2 %437 }
 0x186   : > { %v441_v54 = vmul.f32 %v438_v53, %v429_v52 }
 0x18a   : > { %v400_v28 = vpop.permute.xlu1 %399 }
 0x18b   : > { %v407_v29 = vsub.f32 %v378_v9, %v400_v28 }
 0x18d   : > { %v409_v30 = vmul.f32 1.442695, %v407_v29 }
 0x18f   : > { %733 = vpow2.f32 %v409_v30 }
 0x192   : > { %v405_v31 = vpop.permute.xlu1 %404 }
 0x193   : > { %v408_v32 = vsub.f32 %v379_v12, %v405_v31 }
 0x195   : > { %v734_v33 = vpop.eup %733  ;;  %v411_v34 = vmul.f32 1.442695, %v408_v32 }
 0x196   : > { %v417_v35 = vsel %vm382_vm3, %v734_v33, 0.0 }
 0x197   : > { %735 = vpow2.f32 %v411_v34  ;;  %418 = vadd.xlane.f32.xlu0 %v417_v35 }
 0x19d   : > { %v736_v36 = vpop.eup %735 }
 0x19e   : > { %v420_v37 = vsel %vm382_vm3, %v736_v36, 0.0  ;;  %v442_v38 = vpack.c.bf16 %v736_v36, %v734_v33 }
 0x19f   : > { %421 = vadd.xlane.f32.xlu1 %v420_v37 }
 0x1a0   : > { %676 = vmatmul.msk.bf16.vlgmr.msra.gmra.mxu1 %vm382_vm3, %v442_v38 }
 0x20a   : > { %v419_v41 = vpop.xlane.xlu0 %418 }
 0x20b   : > { %v423_v42 = vadd.f32 %v419_v41, %v415_v40 }
 0x20d   : > { %426 = vst.msk [vmem:[#allocation3] sm:$0xff] %vm321_vm0, %v423_v42 }
 0x212   : > { %v422_v45 = vpop.xlane.xlu1 %421 }
 0x213   : > { %v424_v46 = vadd.f32 %v422_v45, %v416_v44 }
 0x215   : > { %427 = vst.msk [vmem:[#allocation3 + $0x8] sm:$0xff] %vm321_vm0, %v424_v46 }
 0x21d   : > { %v461_v50 = vpop.f32.mrf.mxu1 }
 0x21e   : > { %v466_v51 = vadd.f32 %v461_v50, %v440_v49 }
 0x220   : > { %468 = vst.msk [vmem:[#allocation4] sm:$0xff] %vm326_vm1, %v466_v51 }
 0x225   : > { %v463_v55 = vpop.f32.mrf.mxu1 }
 0x226   : > { %v467_v56 = vadd.f32 %v463_v55, %v441_v54 }
 0x228   : > { %469 = vst.msk [vmem:[#allocation4 + $0x8] sm:$0xff] %vm326_vm1, %v467_v56 }
 0x229 PF: > { %v477_v57 = vld [vmem:[#allocation3] sm:$0xff]  ;;  %v785_v58 = vmov 0   ;;  %v478_v59 = vld [vmem:[#allocation3 + $0x8] sm:$0xff]  ;;  %vm495_vm4 = vcmask 60416  }
 0x22a   : > { %737 = vset.pattern.permute.xlu0 %v785_v58  ;;  %738 = vrcp.f32 %v477_v57  ;;  %v475_v62 = vld [vmem:[#allocation4] sm:$0xff] }
 0x22b   : > { %740 = vrcp.f32 %v478_v59 }
 0x22f   : > { %v476_v2 = vld [vmem:[#allocation4 + $0x8] sm:$0xff] }
 0x230   : > { %v739_v60 = vpop.eup %738 }
 0x231   : > { %483 = vperm.xlu0 %737, %v739_v60   ;;  %v741_v61 = vpop.eup %740 }
 0x239   : > { %488 = vperm.xlu0 %737, %v741_v61  }
 0x2a3   : > { %v484_v63 = vpop.permute.xlu0 %483 }
 0x2a4   : > { %v491_v0 = vmul.f32 %v484_v63, %v475_v62 }
 0x2a6   : > { %v493_v1 = vpack.c.bf16 %v491_v0, %v491_v0 }
 0x2a8   : > { %496 = vst.msk [vmem:[%s868_s13] sm:$0xf] %vm495_vm4, %v493_v1 }
 0x2ab   : > { %v489_v3 = vpop.permute.xlu0 %488 }
 0x2ac   : > { %v492_v4 = vmul.f32 %v489_v3, %v476_v2 }
 0x2ae   : > { %v494_v5 = vpack.c.bf16 %v492_v4, %v492_v4 }
 0x2b0   : > { %497 = vst.msk [vmem:[%s868_s13 + $0x4] sm:$0xf] %vm495_vm4, %v494_v5 }
 0x2b1 PF: > { %s15_s21 = sadd.s32 1, %s780_s21   ;;  %s910_s17 = smov %s772_s19 }
 0x2b2   : > { %p12_p8 = scmp.ge.s32.totalorder %s15_s21, 6   ;;  %s911_s18 = smov %s776_s20 }
 0x2b3   : > { %s912_s19 = smov %s915_s0  ;;  %s913_s20 = smov %s919_s22 }
 0x2b4   :  { %14 = sbr.rel (!%p12_p8) target bundleno = 3 (0x3), region = 80 }

</bundles_post_ra>
